<compile_context>
chip_gen: v6e
topology: v6e:2x2x1
jax: 0.10.0
libtpu: 0.0.40
codegen_flags: <defaults>
</compile_context>

<pallas_src>
import math
from functools import partial

import jax
import jax.numpy as jnp
from jax.experimental import pallas as pl
from jax.experimental.pallas import tpu as pltpu

# ---------------------------------------------------------------------------
# Constants. a_r, c_r, a_t, c_t, x6, nu are undefined globals in the original
# script; they are fixed deterministically here. b_t_glass is from the source.
# TODO(synk): a_r/c_r/a_t/c_t/x6/nu were free globals in the PyTorch file.
A_R, C_R = 0.1, 0.05
A_T, C_T = 0.9, 0.02
B_T_GLASS = 10.0


# ---------------------------------------------------------------------------
# Pallas kernel: ray propagation + gaussian imaging + Fourier magnitude.
# Single invocation, everything resident in VMEM.
def optical_kernel(unisurf_ref, x_ref, x6_ref, cos_ref, sin_ref, y_ref, img_out_ref):
    # 2x2 unisurf matrix, flattened row-major into SMEM scalars.
    u00 = unisurf_ref[0]
    u01 = unisurf_ref[1]
    u10 = unisurf_ref[2]
    u11 = unisurf_ref[3]

    xv = x_ref[...]              # (2, N)
    x0 = xv[0:1, :]              # (1, N)  ray heights
    x1 = xv[1:2, :]              # (1, N)  ray angles
    y0 = u00 * x0 + u01 * x1     # unisurf @ x, row 0
    y1 = u10 * x0 + u11 * x1     # unisurf @ x, row 1
    y_ref[0:1, :] = y0
    y_ref[1:2, :] = y1

    # Gaussian line-spread: y4[p, n] = x6[p] - y0[n]
    x6c = x6_ref[...]                                   # (P, 1)
    y4 = x6c - y0                                       # (P, N)
    # NOTE: 1/sqrt(2*pi) factor dropped — it cancels under img / sum(img).
    y5 = jnp.exp(-0.5 * y4 * y4)                        # (P, N)
    img = jnp.sum(y5, axis=-1, keepdims=True)           # (P, 1)
    img = img / jnp.sum(img)

    # Fourier magnitude via precomputed trig tables (P, F): no in-kernel trig.
    c = jnp.sum(img * cos_ref[...], axis=0, keepdims=True)  # (1, F)
    s = jnp.sum(img * sin_ref[...], axis=0, keepdims=True)  # (1, F)
    img_out_ref[...] = jnp.sqrt(c * c + s * s)


def optical_pallas(unisurf, x_flat, x6_col, cos_tbl, sin_tbl):
    _, n = x_flat.shape
    p, f = cos_tbl.shape

    y, img = pl.pallas_call(
        optical_kernel,
        out_shape=(
            jax.ShapeDtypeStruct((2, n), jnp.float32),
            jax.ShapeDtypeStruct((1, f), jnp.float32),
        ),
        in_specs=[
            pl.BlockSpec(memory_space=pltpu.MemorySpace.SMEM),   # unisurf (4,)
            pl.BlockSpec(memory_space=pltpu.MemorySpace.VMEM),   # x_flat (2, N)
            pl.BlockSpec(memory_space=pltpu.MemorySpace.VMEM),   # x6 column (P, 1)
            pl.BlockSpec(memory_space=pltpu.MemorySpace.VMEM),   # cos table (P, F)
            pl.BlockSpec(memory_space=pltpu.MemorySpace.VMEM),   # sin table (P, F)
        ],
        out_specs=(
            pl.BlockSpec(memory_space=pltpu.MemorySpace.VMEM),   # propagated rays
            pl.BlockSpec(memory_space=pltpu.MemorySpace.VMEM),   # Fourier magnitude
        ),
    )(
        unisurf.reshape(4).astype(jnp.float32),
        x_flat.astype(jnp.float32),
        x6_col,
        cos_tbl,
        sin_tbl,
    )
    return y, img[0]


# ---------------------------------------------------------------------------
# Plain-JAX glue: fc2 MLP + per-surface 2x2 ray-transfer chain ("unisurf").
def init_mlp(key, sizes):
    params = []
    for i, (fi, fo) in enumerate(zip(sizes[:-1], sizes[1:])):
        kw, kb = jax.random.split(jax.random.fold_in(key, i))
        bound = 1.0 / math.sqrt(fi)
        w = jax.random.uniform(kw, (fi, fo), jnp.float32, -bound, bound)
        b = jax.random.uniform(kb, (fo,), jnp.float32, -bound, bound)
        params.append((w, b))
    return params


def mlp_fc2(params, v):
    # Linear -> Dropout(identity, eval) -> LeakyReLU, x3, then Linear -> Sigmoid
    h = v
    for (w, b) in params[:-1]:
        h = h @ w + b
        h = jnp.where(h >= 0, h, 0.01 * h)
    w, b = params[-1]
    return jax.nn.sigmoid(h @ w + b)


def build_unisurf(obj_dist, materials, rath_params, p_params, rand_vals, fc2_params):
    f32 = jnp.float32
    one, zero = f32(1.0), f32(0.0)
    unisurf = jnp.array([[1.0, obj_dist], [0.0, 1.0]], jnp.float32)
    for i in range(len(materials)):
        fc2_out = p_params[i]
        mix = fc2_out * mlp_fc2(fc2_params, rath_params[i]) + (1.0 - fc2_out) * rand_vals[i]
        rp = mix.reshape(2, 2)
        coef = C_T if i % 2 == 1 else B_T_GLASS
        rt01 = A_T + coef * rp[0, 1]            # RT[0,1]
        rt10 = A_R + C_R * rp[1, 0]             # RT[1,0]
        n1 = materials[i - 1] if i > 0 else 1.0
        n2 = materials[i]
        n_out = jnp.where(rt10 > 0.0, f32(n1), f32(n2))
        n_in = jnp.where(rt10 > 0.0, f32(n2), f32(n1))
        m_left = jnp.stack([jnp.stack([one, rt01]), jnp.stack([zero, one])])
        m_right = jnp.stack([
            jnp.stack([one, zero]),
            jnp.stack([(n_out - n_in) / (f32(n2) * rt10), f32(n1 / n2)]),
        ])
        unisurf = m_left @ m_right @ unisurf
    return unisurf


@partial(jax.jit, static_argnames=("obj_dist", "materials"))
def optical_forward(x, rath_params, p_params, rand_vals, fc2_params, x6, nu,
                    *, obj_dist, materials):
    unisurf = build_unisurf(obj_dist, materials, rath_params, p_params,
                            rand_vals, fc2_params)
    # torch.transpose(x, 0, 2) then reshape(2, -1)   (fused into this dispatch by jit)
    x_flat = jnp.transpose(x, (2, 1, 0)).reshape(2, -1)

    p = x6.shape[0]
    f = nu.shape[0]
    x6_col = x6.reshape(p, 1).astype(jnp.float32)
    # Precomputed trig tables — constants per call, no trig inside the kernel.
    arg = (2.0 * math.pi) * x6_col * nu.reshape(1, f).astype(jnp.float32)   # (P, F)
    cos_tbl = jnp.cos(arg)
    sin_tbl = jnp.sin(arg)

    y, img_spec = optical_pallas(unisurf, x_flat, x6_col, cos_tbl, sin_tbl)
    x_out = jnp.transpose(y, (1, 0))            # final torch.transpose(x, 0, 1)
    return x_out, img_spec


# ---------------------------------------------------------------------------
if __name__ == "__main__":
    key = jax.random.PRNGKey(0)
    k_rath, k_rand, k_fc, k_x = jax.random.split(key, 4)

    materials = (1.5, 1.0)          # n_surfs = 2 (tuple: static under jit)
    obj_dist = 1.0
    n_points = 64                   # len(x6)
    img_height = 1.0
    n_freq = 32                     # len(nu)

    rath_params = [jax.random.uniform(jax.random.fold_in(k_rath, i), (4,), jnp.float32)
                   for i in range(len(materials))]
    p_params = [0.5 * jnp.ones((4,), jnp.float32) for _ in materials]
    # deterministic stand-in for torch.rand_like in forward
    rand_vals = [jax.random.uniform(jax.random.fold_in(k_rand, i), (4,), jnp.float32)
                 for i in range(len(materials))]
    fc2_params = init_mlp(k_fc, [4, 128, 64, 8, 4])

    x = 0.01 * jax.random.normal(k_x, (16, 16, 2), jnp.float32)   # (A, B, 2)
    obj = jnp.zeros((16, 16), jnp.float32)                         # unused by forward
    x6 = jnp.linspace(-img_height, img_height, n_points).astype(jnp.float32)
    nu = jnp.linspace(0.0, 4.0, n_freq).astype(jnp.float32)

    x_out, img_spec = optical_forward(x, rath_params, p_params, rand_vals,
                                      fc2_params, x6, nu,
                                      obj_dist=obj_dist, materials=materials)
    jax.block_until_ready((x_out, img_spec))
    assert x_out.shape == (16 * 16, 2)
    assert img_spec.shape == (n_freq,)
    print("KERNEL_OK")
</pallas_src>

<mosaic_0001>
module attributes {stable_mosaic.version = 11 : i64} {
  func.func @optical_kernel(%arg0: memref<4xf32, #tpu.memory_space<smem>>, %arg1: memref<2x256xf32, #tpu.memory_space<vmem>>, %arg2: memref<64x1xf32, #tpu.memory_space<vmem>>, %arg3: memref<64x32xf32, #tpu.memory_space<vmem>>, %arg4: memref<64x32xf32, #tpu.memory_space<vmem>>, %arg5: memref<2x256xf32, #tpu.memory_space<vmem>>, %arg6: memref<1x32xf32, #tpu.memory_space<vmem>>) attributes {dimension_semantics = [], scalar_prefetch = 0 : i64, scratch_operands = 0 : i64, tpu.core_type = #tpu.core_type<tc>} {
    %c0 = arith.constant 0 : index
    %0 = memref.load %arg0[%c0] : memref<4xf32, #tpu.memory_space<smem>>
    %c1 = arith.constant 1 : index
    %1 = memref.load %arg0[%c1] : memref<4xf32, #tpu.memory_space<smem>>
    %c2 = arith.constant 2 : index
    %2 = memref.load %arg0[%c2] : memref<4xf32, #tpu.memory_space<smem>>
    %c3 = arith.constant 3 : index
    %3 = memref.load %arg0[%c3] : memref<4xf32, #tpu.memory_space<smem>>
    %c0_0 = arith.constant 0 : index
    %c0_1 = arith.constant 0 : index
    %4 = vector.load %arg1[%c0_0, %c0_1] : memref<2x256xf32, #tpu.memory_space<vmem>>, vector<2x256xf32>
    %5 = vector.extract_strided_slice %4 {offsets = [0, 0], sizes = [1, 256], strides = [1, 1]} : vector<2x256xf32> to vector<1x256xf32>
    %6 = vector.extract_strided_slice %4 {offsets = [1, 0], sizes = [1, 256], strides = [1, 1]} : vector<2x256xf32> to vector<1x256xf32>
    %7 = vector.broadcast %0 : f32 to vector<1x256xf32>
    %8 = arith.mulf %7, %5 : vector<1x256xf32>
    %9 = vector.broadcast %1 : f32 to vector<1x256xf32>
    %10 = arith.mulf %9, %6 : vector<1x256xf32>
    %11 = arith.addf %8, %10 : vector<1x256xf32>
    %12 = vector.broadcast %2 : f32 to vector<1x256xf32>
    %13 = arith.mulf %12, %5 : vector<1x256xf32>
    %14 = vector.broadcast %3 : f32 to vector<1x256xf32>
    %15 = arith.mulf %14, %6 : vector<1x256xf32>
    %16 = arith.addf %13, %15 : vector<1x256xf32>
    %c0_2 = arith.constant 0 : index
    %c0_3 = arith.constant 0 : index
    %17 = vector.load %arg5[%c0_2, %c0_3] : memref<2x256xf32, #tpu.memory_space<vmem>>, vector<1x256xf32>
    tpu.vector_store %arg5[%c0_2, %c0_3], %11 {strides = array<i32>} : memref<2x256xf32, #tpu.memory_space<vmem>>, vector<1x256xf32>,
    %c1_4 = arith.constant 1 : index
    %c0_5 = arith.constant 0 : index
    %18 = vector.load %arg5[%c1_4, %c0_5] : memref<2x256xf32, #tpu.memory_space<vmem>>, vector<1x256xf32>
    tpu.vector_store %arg5[%c1_4, %c0_5], %16 {strides = array<i32>} : memref<2x256xf32, #tpu.memory_space<vmem>>, vector<1x256xf32>,
    %c0_6 = arith.constant 0 : index
    %c0_7 = arith.constant 0 : index
    %19 = vector.load %arg2[%c0_6, %c0_7] : memref<64x1xf32, #tpu.memory_space<vmem>>, vector<64x1xf32>
    %20 = vector.broadcast %19 : vector<64x1xf32> to vector<64x256xf32>
    %21 = vector.broadcast %11 : vector<1x256xf32> to vector<64x256xf32>
    %22 = arith.subf %20, %21 : vector<64x256xf32>
    %cst = arith.constant -5.000000e-01 : f32
    %23 = vector.broadcast %cst : f32 to vector<64x256xf32>
    %24 = arith.mulf %23, %22 : vector<64x256xf32>
    %25 = arith.mulf %24, %22 : vector<64x256xf32>
    %26 = math.exp %25 : vector<64x256xf32>
    %cst_8 = arith.constant dense<0.000000e+00> : vector<64xf32>
    %27 = vector.multi_reduction <add>, %26, %cst_8 [1] : vector<64x256xf32> to vector<64xf32>
    %28 = vector.shape_cast %27 : vector<64xf32> to vector<64x1xf32>
    %29 = vector.shape_cast %28 : vector<64x1xf32> to vector<1x64x1xf32>
    %cst_9 = arith.constant dense<0.000000e+00> : vector<1xf32>
    %30 = vector.multi_reduction <add>, %29, %cst_9 [1, 2] : vector<1x64x1xf32> to vector<1xf32>
    %31 = vector.shape_cast %30 : vector<1xf32> to vector<1x1x1xf32>
    %32 = vector.extract %31[0, 0, 0] : f32 from vector<1x1x1xf32>
    %33 = vector.broadcast %32 : f32 to vector<64x1xf32>
    %34 = arith.divf %28, %33 : vector<64x1xf32>
    %c0_10 = arith.constant 0 : index
    %c0_11 = arith.constant 0 : index
    %35 = vector.load %arg3[%c0_10, %c0_11] : memref<64x32xf32, #tpu.memory_space<vmem>>, vector<64x32xf32>
    %36 = vector.broadcast %34 : vector<64x1xf32> to vector<64x32xf32>
    %37 = arith.mulf %36, %35 : vector<64x32xf32>
    %cst_12 = arith.constant dense<0.000000e+00> : vector<32xf32>
    %38 = vector.multi_reduction <add>, %37, %cst_12 [0] : vector<64x32xf32> to vector<32xf32>
    %39 = vector.shape_cast %38 : vector<32xf32> to vector<1x32xf32>
    %c0_13 = arith.constant 0 : index
    %c0_14 = arith.constant 0 : index
    %40 = vector.load %arg4[%c0_13, %c0_14] : memref<64x32xf32, #tpu.memory_space<vmem>>, vector<64x32xf32>
    %41 = vector.broadcast %34 : vector<64x1xf32> to vector<64x32xf32>
    %42 = arith.mulf %41, %40 : vector<64x32xf32>
    %cst_15 = arith.constant dense<0.000000e+00> : vector<32xf32>
    %43 = vector.multi_reduction <add>, %42, %cst_15 [0] : vector<64x32xf32> to vector<32xf32>
    %44 = vector.shape_cast %43 : vector<32xf32> to vector<1x32xf32>
    %45 = arith.mulf %39, %39 : vector<1x32xf32>
    %46 = arith.mulf %44, %44 : vector<1x32xf32>
    %47 = arith.addf %45, %46 : vector<1x32xf32>
    %48 = math.sqrt %47 : vector<1x32xf32>
    %c0_16 = arith.constant 0 : index
    %c0_17 = arith.constant 0 : index
    %49 = vector.load %arg6[%c0_16, %c0_17] : memref<1x32xf32, #tpu.memory_space<vmem>>, vector<1x32xf32>
    tpu.vector_store %arg6[%c0_16, %c0_17], %48 {strides = array<i32>} : memref<1x32xf32, #tpu.memory_space<vmem>>, vector<1x32xf32>,
    return
  }
}

</mosaic_0001>

<bundles_post_ra>
// kernel: optical_forward.1
= control target key start
LH: loop header
LB: loop body
LE: loop exit
PB: predicated region body
PF: predicated region fallthrough
CT: control target
= control target key end

     0   :  { %12 = vsyncpa [#allocation4], 0  ;;  %s728_s0 = inlined_call_operand.vmem [shape: f32[4], index: 0, kind: input, shape index: {}]   ;;  %s729_s1 = inlined_call_operand.vmem [shape: f32[2,256], index: 1, kind: input, shape index: {}]   ;;  %s730_s2 = inlined_call_operand.vmem [shape: f32[64,1], index: 2, kind: input, shape index: {}]   ;;  %s731_s3 = inlined_call_operand.vmem [shape: f32[64,32], index: 3, kind: input, shape index: {}]   ;;  %s732_s4 = inlined_call_operand.vmem [shape: f32[64,32], index: 4, kind: input, shape index: {}]   ;;  %s733_s5 = inlined_call_operand.hbm [shape: f32[2,256], index: 5, kind: output, shape index: {0}]   ;;  %s734_s6 = inlined_call_operand.hbm [shape: f32[1,32], index: 6, kind: output, shape index: {1}]  }
   0x1   :  { %13 = vsyncpa [#allocation3], 0 }
   0x2   :  { %14 = vsyncpa [#allocation7], 0  ;;  %s21_s23 = sshll.u32 %s728_s0, 4  ;;  %s22_s23 = int_to_ptr.vmem [resolvable:$true] %s21_s23 }
   0x3   :  { %s456_s24 = scalar_lea.vmem %s22_s23, 16  ;;  %p461_p1 = scmp.lt.s32.totalorder %s22_s23, %s22_s23 }
   0x4   :  { %p457_p0 = scmp.ne.s32.totalorder %s22_s23, %s456_s24  ;;  %p462_p2 = scmp.lt.s32.totalorder %s456_s24, %s456_s24 }
   0x6   :  { %p463_p3 = por %p462_p2, %p461_p1 }
   0x8   :  { %p464_p4 = pnand %p463_p3, %p457_p0 }
   0xa   :  { %467 = shalt.err (!%p464_p4)
}
   0xb   :  { %s514_s25 = smov [#allocation2]  }
   0xc   :  { %24 = dma.vmem_to_smem %s22_s23, 16, %s514_s25, [#allocation4]  }
   0xd   :  { %508 = dma.done.wait [#allocation4], 16  }
   0xe   :  { %509 = vsyncadd [#allocation4], 4294967280 }
   0xf   :  { %36 = sfence }
  0x10   :  { %v87_v0 = vld [vmem:[%s730_s2 + $0x10] sm:$0xff]  ;;  %v85_v1 = vld [vmem:[%s730_s2] sm:$0xff]  ;;  %v515_v2 = vmov 0   ;;  %v88_v3 = vld [vmem:[%s730_s2 + $0x18] sm:$0xff]  ;;  %s406_s17 = sld [smem:[#allocation2 + $0x1]]  ;;  %v64_v12 = vlaneseq  ;;  %vm255_vm0 = vcmask 7168  }
  0x11   :  { %419 = vset.pattern.permute.xlu1 %v515_v2  ;;  %418 = vset.pattern.permute.xlu0 %v515_v2  ;;  %v86_v4 = vld [vmem:[%s730_s2 + $0x8] sm:$0xff]  ;;  %v89_v6 = vld [vmem:[%s730_s2 + $0x20] sm:$0xff]  ;;  %v92_v7 = vld [vmem:[%s730_s2 + $0x38] sm:$0xff]  ;;  %s37_s18 = sld [smem:[#allocation2]]  ;;  %s517_s21 = smov [#allocation5]  }
  0x12   :  { %105 = vperm.xlu1 %419, %v87_v0   ;;  %95 = vperm.xlu0 %418, %v85_v1   ;;  %v90_v5 = vld [vmem:[%s730_s2 + $0x28] sm:$0xff]  ;;  %v91_v8 = vld [vmem:[%s730_s2 + $0x30] sm:$0xff]  ;;  %v584_v9 = vld [vmem:[%s729_s1] sm:$0xf]  ;;  %v589_v16 = vshrl.u32 %v64_v12, 7  ;;  %s407_s1 = sld [smem:[#allocation2 + $0x2]] }
  0x13   :  { %s408_s2 = sld [smem:[#allocation2 + $0x3]]  ;;  %vm71_vm1 = vcmp.lt.s32.totalorder %v64_v12, 256  ;;  %s383_s22 = sshll.u32 %s517_s21, 4  ;;  %s384_s22 = int_to_ptr.vmem [resolvable:$true] %s383_s22 }
  0x14   :  { %v135_v18 = vsub.s32 0, %v589_v16  ;;  %v139_v19 = vsub.s32 2, %v589_v16  ;;  %s468_s23 = scalar_lea.vmem %s384_s22, 64  ;;  %p473_p6 = scmp.lt.s32.totalorder %s384_s22, %s384_s22 }
  0x15   :  { %p469_p5 = scmp.ne.s32.totalorder %s384_s22, %s468_s23  ;;  %p474_p7 = scmp.lt.s32.totalorder %s468_s23, %s468_s23 }
  0x16   :  { %110 = vperm.xlu1 %419, %v88_v3   ;;  %100 = vperm.xlu0 %418, %v86_v4   ;;  %v44_v10 = vstv %s406_s17 }
  0x17   :  { %v45_v11 = vmul.f32 %v44_v10, %v584_v9  ;;  %v42_v13 = vstv %s37_s18  ;;  %p475_p8 = por %p474_p7, %p473_p6 }
  0x18   :  { %v43_v14 = vmul.f32 %v42_v13, %v584_v9 }
  0x19   :  { %v409_v15 = vrot.slane %v45_v11, 9  ;;  %p476_p9 = pnand %p475_p8, %p469_p5 }
  0x1a   :  { %120 = vperm.xlu1 %419, %v90_v5   ;;  %115 = vperm.xlu0 %418, %v89_v6  }
  0x1b   :  { %v591_v17 = vadd.f32 %v409_v15, %v43_v14 }
  0x1d   :  { %v136_v20 = vrot.slane %v591_v17, %v135_v18  ;;  %v140_v21 = vrot.slane %v591_v17, %v139_v19 }
  0x1e   :  { %130 = vperm.xlu1 %419, %v92_v7   ;;  %125 = vperm.xlu0 %418, %v91_v8  }
  0x1f   :  { %v597_v22 = vrot.slane %v136_v20, %v135_v18  ;;  %v599_v23 = vrot.slane %v140_v21, %v135_v18 }
  0x8d   :  { %v106_v24 = vpop.permute.xlu1 %105  ;;  %v96_v25 = vpop.permute.xlu0 %95 }
  0x8e   :  { %v155_v26 = vsub.f32 %v106_v24, %v597_v22  ;;  %v156_v27 = vsub.f32 %v106_v24, %v599_v23  ;;  %v151_v28 = vsub.f32 %v96_v25, %v597_v22  ;;  %v152_v29 = vsub.f32 %v96_v25, %v599_v23 }
  0x90   :  { %v171_v30 = vmul.f32 -0.5, %v155_v26  ;;  %v172_v31 = vmul.f32 -0.5, %v156_v27  ;;  %v167_v32 = vmul.f32 -0.5, %v151_v28  ;;  %v168_v33 = vmul.f32 -0.5, %v152_v29 }
  0x91   :  { %v111_v34 = vpop.permute.xlu1 %110  ;;  %v101_v35 = vpop.permute.xlu0 %100 }
  0x92   :  { %v187_v36 = vmul.f32 %v171_v30, %v155_v26  ;;  %v188_v37 = vmul.f32 %v172_v31, %v156_v27  ;;  %v183_v38 = vmul.f32 %v167_v32, %v151_v28  ;;  %v184_v39 = vmul.f32 %v168_v33, %v152_v29 }
  0x93   :  { %v157_v40 = vsub.f32 %v111_v34, %v597_v22  ;;  %v158_v41 = vsub.f32 %v111_v34, %v599_v23  ;;  %v153_v42 = vsub.f32 %v101_v35, %v597_v22  ;;  %v154_v43 = vsub.f32 %v101_v35, %v599_v23 }
  0x94   :  { %v207_v44 = vmul.f32 1.442695, %v187_v36  ;;  %v209_v45 = vmul.f32 1.442695, %v188_v37  ;;  %v199_v46 = vmul.f32 1.442695, %v183_v38 }
  0x95   :  { %v201_v47 = vmul.f32 1.442695, %v184_v39  ;;  %v173_v48 = vmul.f32 -0.5, %v157_v40  ;;  %v174_v49 = vmul.f32 -0.5, %v158_v41  ;;  %v169_v50 = vmul.f32 -0.5, %v153_v42  ;;  %v121_v51 = vpop.permute.xlu1 %120  ;;  %v116_v52 = vpop.permute.xlu0 %115 }
  0x96   :  { %420 = vpow2.f32 %v207_v44  ;;  %v170_v53 = vmul.f32 -0.5, %v154_v43  ;;  %v161_v54 = vsub.f32 %v121_v51, %v597_v22  ;;  %v162_v55 = vsub.f32 %v121_v51, %v599_v23 }
  0x97   :  { %422 = vpow2.f32 %v209_v45  ;;  %v189_v56 = vmul.f32 %v173_v48, %v157_v40  ;;  %v190_v57 = vmul.f32 %v174_v49, %v158_v41  ;;  %v185_v58 = vmul.f32 %v169_v50, %v153_v42 }
  0x98   :  { %424 = vpow2.f32 %v199_v46  ;;  %v186_v59 = vmul.f32 %v170_v53, %v154_v43  ;;  %v177_v60 = vmul.f32 -0.5, %v161_v54  ;;  %v178_v61 = vmul.f32 -0.5, %v162_v55 }
  0x99   :  { %426 = vpow2.f32 %v201_v47  ;;  %v211_v62 = vmul.f32 1.442695, %v189_v56  ;;  %v203_v63 = vmul.f32 1.442695, %v185_v58  ;;  %v131_v0 = vpop.permute.xlu1 %130  ;;  %v159_v4 = vsub.f32 %v116_v52, %v597_v22  ;;  %v126_v10 = vpop.permute.xlu0 %125 }
  0x9a   :  { %v205_v1 = vmul.f32 1.442695, %v186_v59  ;;  %v193_v2 = vmul.f32 %v177_v60, %v161_v54  ;;  %v194_v3 = vmul.f32 %v178_v61, %v162_v55  ;;  %v213_v5 = vmul.f32 1.442695, %v190_v57 }
  0x9b   :  { %v160_v6 = vsub.f32 %v116_v52, %v599_v23  ;;  %v165_v7 = vsub.f32 %v131_v0, %v597_v22  ;;  %v166_v8 = vsub.f32 %v131_v0, %v599_v23  ;;  %428 = vpow2.f32 %v211_v62 }
  0x9c   :  { %v219_v11 = vmul.f32 1.442695, %v193_v2  ;;  %v221_v13 = vmul.f32 1.442695, %v194_v3  ;;  %v175_v14 = vmul.f32 -0.5, %v159_v4  ;;  %430 = vpow2.f32 %v203_v63 }
  0x9d   :  { %v176_v15 = vmul.f32 -0.5, %v160_v6  ;;  %v181_v18 = vmul.f32 -0.5, %v165_v7  ;;  %v182_v19 = vmul.f32 -0.5, %v166_v8  ;;  %432 = vpow2.f32 %v205_v1 }
  0x9e   :  { %v191_v20 = vmul.f32 %v175_v14, %v159_v4  ;;  %v163_v21 = vsub.f32 %v126_v10, %v597_v22  ;;  %v164_v24 = vsub.f32 %v126_v10, %v599_v23  ;;  %434 = vpow2.f32 %v213_v5 }
  0x9f   :  { %v192_v25 = vmul.f32 %v176_v15, %v160_v6  ;;  %v197_v26 = vmul.f32 %v181_v18, %v165_v7  ;;  %v198_v27 = vmul.f32 %v182_v19, %v166_v8  ;;  %436 = vpow2.f32 %v219_v11 }
  0xa0   :  { %v215_v28 = vmul.f32 1.442695, %v191_v20  ;;  %v179_v29 = vmul.f32 -0.5, %v163_v21  ;;  %v180_v30 = vmul.f32 -0.5, %v164_v24  ;;  %438 = vpow2.f32 %v221_v13 }
  0xa1   :  { %v217_v31 = vmul.f32 1.442695, %v192_v25  ;;  %v227_v32 = vmul.f32 1.442695, %v197_v26  ;;  %v229_v33 = vmul.f32 1.442695, %v198_v27 }
  0xa2   :  { %440 = vpow2.f32 %v215_v28  ;;  %v195_v34 = vmul.f32 %v179_v29, %v163_v21  ;;  %v196_v35 = vmul.f32 %v180_v30, %v164_v24  ;;  %v516_v25 = vmov 1966171168  }
  0xa3   :  { %v421_v36 = vpop.eup %420  ;;  %442 = vpow2.f32 %v217_v31  ;;  %v62_v26 = vunpack.c.l.s4 %v516_v25  ;;  %v51_v29 = vstv %s407_s1  ;;  %v53_v30 = vstv %s408_s2 }
  0xa4   :  { %v423_v22 = vpop.eup %422  ;;  %444 = vpow2.f32 %v227_v32  ;;  %v223_v23 = vmul.f32 1.442695, %v195_v34  ;;  %v225_v37 = vmul.f32 1.442695, %v196_v35  ;;  %v52_v32 = vmul.f32 %v51_v29, %v584_v9 }
  0xa5   :  { %v425_v38 = vpop.eup %424  ;;  %446 = vpow2.f32 %v229_v33  ;;  %v237_v44 = vadd.f32 %v423_v22, %v421_v36  ;;  %v63_v27 = vunpack.c.0.s8 %v62_v26  ;;  %v54_v33 = vmul.f32 %v53_v30, %v584_v9 }
  0xa6   :  { %v427_v39 = vpop.eup %426  ;;  %448 = vpow2.f32 %v223_v23 }
  0xa7   :  { %450 = vpow2.f32 %v225_v37  ;;  %v231_v40 = vadd.f32 %v427_v39, %v425_v38  ;;  %v66_v28 = vsub.s32 %v63_v27, %v589_v16  ;;  %v410_v34 = vrot.slane %v54_v33, 9 }
  0xa8   :  { %v429_v41 = vpop.eup %428 }
  0xa9   :  { %232 = vadd.xlane.f32.xlu0 %v231_v40  ;;  %v431_v42 = vpop.eup %430  ;;  %v67_v31 = vrot.slane %v591_v17, %v66_v28  ;;  %v59_v35 = vadd.f32 %v410_v34, %v52_v32 }
  0xaa   :  { %v433_v43 = vpop.eup %432 }
  0xab   :  { %v435_v45 = vpop.eup %434  ;;  %v234_v46 = vadd.f32 %v433_v43, %v431_v42  ;;  %73 = vst.msk [vmem:[#allocation5] ss:$2 sm:$0x3] %vm71_vm1, %v67_v31  ;;  %v81_v36 = vrot.slane %v59_v35, %v66_v28 }
  0xac   :  { %v437_v47 = vpop.eup %436  ;;  %v240_v50 = vadd.f32 %v435_v45, %v429_v41 }
  0xad   :  { %238 = vadd.xlane.f32.xlu0 %v237_v44  ;;  %v439_v48 = vpop.eup %438  ;;  %235 = vadd.xlane.f32.xlu1 %v234_v46  ;;  %84 = vst.msk [vmem:[#allocation5 + $0x1] ss:$2 sm:$0x3] %vm71_vm1, %v81_v36 }
  0xae   :  { %v246_v56 = vadd.f32 %v439_v48, %v437_v47 }
  0xaf   :  { %v441_v49 = vpop.eup %440 }
  0xb0   :  { %v443_v51 = vpop.eup %442 }
  0xb1   :  { %v445_v52 = vpop.eup %444  ;;  %v243_v53 = vadd.f32 %v443_v51, %v441_v49  ;;  %241 = vadd.xlane.f32.xlu0 %v240_v50 }
  0xb2   :  { %v447_v54 = vpop.eup %446 }
  0xb3   :  { %v449_v55 = vpop.eup %448  ;;  %244 = vadd.xlane.f32.xlu1 %v243_v53  ;;  %v252_v59 = vadd.f32 %v447_v54, %v445_v52 }
  0xb4   :  { %v451_v57 = vpop.eup %450 }
  0xb5   :  { %v249_v58 = vadd.f32 %v451_v57, %v449_v55  ;;  %247 = vadd.xlane.f32.xlu0 %v246_v56 }
  0xb7   :  { %250 = vadd.xlane.f32.xlu1 %v249_v58 }
  0xb9   :  { %253 = vadd.xlane.f32.xlu0 %v252_v59 }
 0x132   :  { %v617_v60 = vpop.xlane.xlu0 %232 }
 0x133   :  { %v256_v63 = vsel %vm255_vm0, %v617_v60, 0.0 }
 0x136   :  { %v619_v61 = vpop.xlane.xlu0 %238  ;;  %v621_v62 = vpop.xlane.xlu1 %235 }
 0x137   :  { %v257_v0 = vsel %vm255_vm0, %v621_v62, 0.0  ;;  %v259_v2 = vsel %vm255_vm0, %v619_v61, 0.0 }
 0x138   :  { %v258_v1 = vadd.f32 %v257_v0, %v256_v63 }
 0x13a   :  { %v629_v3 = vpop.xlane.xlu0 %241  ;;  %v260_v4 = vadd.f32 %v259_v2, %v258_v1 }
 0x13b   :  { %v261_v5 = vsel %vm255_vm0, %v629_v3, 0.0 }
 0x13c   :  { %v245_v6 = vpop.xlane.xlu1 %244  ;;  %v262_v7 = vadd.f32 %v261_v5, %v260_v4 }
 0x13d   :  { %v263_v8 = vsel %vm255_vm0, %v245_v6, 0.0 }
 0x13e   :  { %v634_v10 = vpop.xlane.xlu0 %247  ;;  %v264_v11 = vadd.f32 %v263_v8, %v262_v7 }
 0x13f   :  { %v265_v13 = vsel %vm255_vm0, %v634_v10, 0.0 }
 0x140   :  { %v638_v14 = vpop.xlane.xlu1 %250  ;;  %v266_v15 = vadd.f32 %v265_v13, %v264_v11 }
 0x141   :  { %v267_v18 = vsel %vm255_vm0, %v638_v14, 0.0 }
 0x142   :  { %v642_v19 = vpop.xlane.xlu0 %253  ;;  %v268_v21 = vadd.f32 %v267_v18, %v266_v15 }
 0x143   :  { %v269_v20 = vsel %vm255_vm0, %v642_v19, 0.0 }
 0x144   :  { %v270_v24 = vadd.f32 %v269_v20, %v268_v21 }
 0x146   :  { %271 = vadd.xlane.f32.xlu1 %v270_v24 }
 0x147   :  { %479 = shalt.err (!%p476_p9)
}
 0x148   :  { %386 = dma.vmem_to_hbm [thread:$0]  %s384_s22, 64, %s733_s5, [#allocation3]   ;;  %v290_v40 = vld [vmem:[%s731_s3] sm:$0xff]  ;;  %v291_v41 = vld [vmem:[%s731_s3 + $0x8] sm:$0xff]  ;;  %v292_v42 = vld [vmem:[%s731_s3 + $0x10] sm:$0xff]  ;;  %vm306_vm2 = vcmask 261120  }
 0x149   :  { %v293_v48 = vld [vmem:[%s731_s3 + $0x18] sm:$0xff]  ;;  %v294_v49 = vld [vmem:[%s731_s3 + $0x20] sm:$0xff]  ;;  %v329_v55 = vld [vmem:[%s732_s4 + $0x8] sm:$0xff]  ;;  %vm375_vm4 = vcmask 253952  }
 0x14a   :  { %v328_v54 = vld [vmem:[%s732_s4] sm:$0xff]  ;;  %v330_v56 = vld [vmem:[%s732_s4 + $0x10] sm:$0xff]  ;;  %v295_v57 = vld [vmem:[%s731_s3 + $0x28] sm:$0xff] }
 0x14b   :  { %v331_v0 = vld [vmem:[%s732_s4 + $0x18] sm:$0xff]  ;;  %v333_v20 = vld [vmem:[%s732_s4 + $0x28] sm:$0xff]  ;;  %v334_v29 = vld [vmem:[%s732_s4 + $0x30] sm:$0xff] }
 0x14c   :  { %v297_v18 = vld [vmem:[%s731_s3 + $0x38] sm:$0xff] }
 0x14d   :  { %v335_v36 = vld [vmem:[%s732_s4 + $0x38] sm:$0xff] }
 0x1cf   :  { %v272_v9 = vpop.xlane.xlu1 %271 }
 0x1d0   :  { %v273_v12 = vrot.slane %v272_v9, 4 }
 0x1d2   :  { %v274_v16 = vadd.f32 %v273_v12, %v272_v9 }
 0x1d4   :  { %v275_v17 = vrot.slane %v274_v16, 2 }
 0x1d6   :  { %v276_v22 = vadd.f32 %v275_v17, %v274_v16 }
 0x1d8   :  { %v277_v23 = vrot.slane %v276_v22, 1 }
 0x1da   :  { %v278_v37 = vadd.f32 %v277_v23, %v276_v22 }
 0x1dc   :  { %411 = vpush %v278_v37 }
 0x20d   :  { %s412_s26 = spop %411 }
 0x20e   :  { %v280_v38 = vstv %s412_s26 }
 0x20f   :  { %452 = vrcp.f32 %v280_v38 }
 0x21c   :  { %v453_v39 = vpop.eup %452 }
 0x21d   :  { %v282_v43 = vmul.f32 %v453_v39, %v617_v60  ;;  %v283_v44 = vmul.f32 %v453_v39, %v621_v62  ;;  %v284_v45 = vmul.f32 %v453_v39, %v619_v61  ;;  %v285_v46 = vmul.f32 %v453_v39, %v629_v3 }
 0x21e   :  { %v286_v47 = vmul.f32 %v453_v39, %v245_v6  ;;  %v287_v53 = vmul.f32 %v453_v39, %v634_v10  ;;  %v288_v61 = vmul.f32 %v453_v39, %v638_v14  ;;  %v289_v5 = vmul.f32 %v453_v39, %v642_v19  ;;  %v296_v6 = vld [vmem:[%s731_s3 + $0x30] sm:$0xff]  ;;  %v332_v10 = vld [vmem:[%s732_s4 + $0x20] sm:$0xff]  ;;  %s518_s4 = smov [#allocation6]  }
 0x21f   :  { %v298_v50 = vmul.f32 %v290_v40, %v282_v43  ;;  %v299_v51 = vmul.f32 %v291_v41, %v283_v44  ;;  %v300_v52 = vmul.f32 %v292_v42, %v284_v45  ;;  %v301_v58 = vmul.f32 %v293_v48, %v285_v46  ;;  %s393_s0 = sshll.u32 %s518_s4, 4  ;;  %s394_s0 = int_to_ptr.vmem [resolvable:$true] %s393_s0 }
 0x220   :  { %v302_v62 = vmul.f32 %v294_v49, %v286_v47  ;;  %v336_v2 = vmul.f32 %v328_v54, %v282_v43  ;;  %v337_v3 = vmul.f32 %v329_v55, %v283_v44  ;;  %v338_v4 = vmul.f32 %v330_v56, %v284_v45  ;;  %s488_s5 = scalar_lea.vmem %s394_s0, 16  ;;  %s492_s30 = scalar_lea.vmem %s394_s0, 32 }
 0x221   :  { %v307_v59 = vsel %vm306_vm2, %v298_v50, 0.0  ;;  %v308_v60 = vsel %vm306_vm2, %v299_v51, 0.0  ;;  %v310_v1 = vsel %vm306_vm2, %v300_v52, 0.0  ;;  %v303_v7 = vmul.f32 %v295_v57, %v287_v53  ;;  %p489_p10 = scmp.ne.s32.totalorder %s394_s0, %s488_s5  ;;  %p493_p11 = scmp.lt.s32.totalorder %s394_s0, %s394_s0 }
 0x222   :  { %v309_v63 = vadd.f32 %v308_v60, %v307_v59  ;;  %v312_v11 = vsel %vm306_vm2, %v301_v58, 0.0  ;;  %v339_v13 = vmul.f32 %v331_v0, %v285_v46  ;;  %v344_v14 = vsel %vm306_vm2, %v336_v2, 0.0  ;;  %p494_p12 = scmp.lt.s32.totalorder %s492_s30, %s488_s5 }
 0x223   :  { %v345_v15 = vsel %vm306_vm2, %v337_v3, 0.0  ;;  %v304_v24 = vmul.f32 %v296_v6, %v288_v61  ;;  %v314_v25 = vsel %vm306_vm2, %v302_v62, 0.0  ;;  %v340_v26 = vmul.f32 %v332_v10, %v286_v47 }
 0x224   :  { %v311_v8 = vadd.f32 %v310_v1, %v309_v63  ;;  %v346_v21 = vadd.f32 %v345_v15, %v344_v14  ;;  %v347_v27 = vsel %vm306_vm2, %v338_v4, 0.0  ;;  %v305_v31 = vmul.f32 %v297_v18, %v289_v5  ;;  %p495_p13 = por %p494_p12, %p493_p11 }
 0x225   :  { %v316_v32 = vsel %vm306_vm2, %v303_v7, 0.0  ;;  %v341_v33 = vmul.f32 %v333_v20, %v287_v53  ;;  %v349_v34 = vsel %vm306_vm2, %v339_v13, 0.0  ;;  %v318_v12 = vsel %vm306_vm2, %v304_v24, 0.0 }
 0x226   :  { %v313_v19 = vadd.f32 %v312_v11, %v311_v8  ;;  %v348_v30 = vadd.f32 %v347_v27, %v346_v21  ;;  %v342_v16 = vmul.f32 %v334_v29, %v288_v61  ;;  %v351_v17 = vsel %vm306_vm2, %v340_v26, 0.0  ;;  %p496_p0 = pnand %p495_p13, %p489_p10 }
 0x227   :  { %v320_v37 = vsel %vm306_vm2, %v305_v31, 0.0  ;;  %v343_v38 = vmul.f32 %v335_v36, %v289_v5  ;;  %v353_v39 = vsel %vm306_vm2, %v341_v33, 0.0 }
 0x228   :  { %v315_v28 = vadd.f32 %v314_v25, %v313_v19  ;;  %v350_v9 = vadd.f32 %v349_v34, %v348_v30  ;;  %v355_v42 = vsel %vm306_vm2, %v342_v16, 0.0 }
 0x229   :  { %v357_v45 = vsel %vm306_vm2, %v343_v38, 0.0 }
 0x22a   :  { %v317_v35 = vadd.f32 %v316_v32, %v315_v28  ;;  %v352_v23 = vadd.f32 %v351_v17, %v350_v9 }
 0x22c   :  { %v319_v22 = vadd.f32 %v318_v12, %v317_v35  ;;  %v354_v41 = vadd.f32 %v353_v39, %v352_v23 }
 0x22e   :  { %v321_v40 = vadd.f32 %v320_v37, %v319_v22  ;;  %v356_v44 = vadd.f32 %v355_v42, %v354_v41 }
 0x230   :  { %v322_v43 = vrot.slane %v321_v40, 4  ;;  %v358_v47 = vadd.f32 %v357_v45, %v356_v44 }
 0x232   :  { %v323_v46 = vadd.f32 %v322_v43, %v321_v40  ;;  %v359_v49 = vrot.slane %v358_v47, 4 }
 0x234   :  { %v324_v48 = vrot.slane %v323_v46, 2  ;;  %v360_v51 = vadd.f32 %v359_v49, %v358_v47 }
 0x236   :  { %v325_v50 = vadd.f32 %v324_v48, %v323_v46  ;;  %v361_v53 = vrot.slane %v360_v51, 2 }
 0x238   :  { %v326_v52 = vrot.slane %v325_v50, 1  ;;  %v362_v55 = vadd.f32 %v361_v53, %v360_v51 }
 0x23a   :  { %v327_v54 = vadd.f32 %v326_v52, %v325_v50  ;;  %v363_v56 = vrot.slane %v362_v55, 1 }
 0x23c   :  { %v364_v57 = vadd.f32 %v363_v56, %v362_v55  ;;  %v365_v58 = vmul.f32 %v327_v54, %v327_v54 }
 0x23e   :  { %v366_v59 = vmul.f32 %v364_v57, %v364_v57 }
 0x240   :  { %v367_v60 = vadd.f32 %v366_v59, %v365_v58 }
 0x242   :  { %454 = vrsqrt.f32 %v367_v60  ;;  %vm370_vm3 = vcmp.eq.f32.partialorder %v367_v60, inf  ;;  %v373_v63 = vand.u32 2147483648, %v367_v60  ;;  %vm372_vm5 = vcmp.eq.f32.partialorder %v367_v60, 0.0 }
 0x24f   :  { %v455_v61 = vpop.eup %454 }
 0x250   :  { %v369_v62 = vmul.f32 %v455_v61, %v367_v60 }
 0x252   :  { %v371_v0 = vsel %vm370_vm3, %v367_v60, %v369_v62 }
 0x253   :  { %v374_v1 = vsel %vm372_vm5, %v373_v63, %v371_v0 }
 0x254   :  { %376 = vst.msk [vmem:[#allocation6] sm:$0x1] %vm375_vm4, %v374_v1 }
 0x255   :  { %499 = shalt.err (!%p496_p0)
}
 0x256   :  { %396 = dma.vmem_to_hbm [thread:$0]  %s394_s0, 16, %s734_s6, [#allocation7]  }
 0x257   :  { %510 = dma.done.wait [#allocation3], 64  }
 0x258   :  { %511 = vsyncadd [#allocation3], 4294967232 }
 0x259   :  { %512 = dma.done.wait [#allocation7], 16  }
 0x25a   :  { %513 = vsyncadd [#allocation7], 4294967280 }
 0x25b   :  { %403 = vsyncpa [#allocation3], 1 }
 0x25c   :  { %404 = vsyncpa [#allocation7], 1 }
 0x25d   :  { %405 = vsyncpa [#allocation4], 1 }

</bundles_post_ra>
